<compile_context>
chip_gen: v7x
topology: tpu7x:2x2x1
jax: 0.10.0
libtpu: 0.0.40
codegen_flags: <defaults>
</compile_context>

<pallas_src>
import functools

import jax
import jax.numpy as jnp
from jax.experimental import pallas as pl
from jax.experimental.pallas import tpu as pltpu


def _round_up(x, m):
    return (x + m - 1) // m * m


def _vmem_capacity_bytes():
    try:
        return int(pltpu.get_tpu_info().vmem_capacity_bytes)
    except Exception:
        return 64 * 1024 * 1024  # conservative fallback (v7x per-TC VMEM)


# --------------------------------------------------------------------------- #
# Kernels
# --------------------------------------------------------------------------- #

def _proj_head_resident_kernel(x_ref, w1_ref, b1_ref, w2_ref, b2_ref, o_ref):
    # Weights fully VMEM-resident; grid = (n_b,); no accumulator / pl.when phases.
    # x_ref: (TB, D) compute dtype; w1_ref: (D, D); w2_ref: (D, O); biases f32.
    h = jnp.dot(x_ref[...], w1_ref[...], preferred_element_type=jnp.float32)
    h = jnp.maximum(h + b1_ref[...], 0.0)
    # TODO(synk): h is quantized to the MXU compute dtype (bf16 by default) before
    # the second matmul; PyTorch runs the head in f32 end-to-end.  Pass
    # compute_dtype=jnp.float32 for bit-closer numerics at lower MXU throughput.
    y = jnp.dot(h.astype(w2_ref.dtype), w2_ref[...],
                preferred_element_type=jnp.float32)
    y = y + b2_ref[...]
    # F.normalize(y, dim=1) == y * rsqrt(max(sum(y^2), (1e-12)^2))
    sumsq = jnp.sum(y * y, axis=-1, keepdims=True)
    inv = jax.lax.rsqrt(jnp.maximum(sumsq, 1e-24))
    o_ref[...] = (y * inv).astype(o_ref.dtype)


def _proj_head_ktiled_kernel(x_ref, w1_ref, b1_ref, w2_ref, b2_ref, o_ref, acc_ref):
    # Hidden-dim tiled fallback (W1 too large for VMEM residency on this chip).
    # grid = (n_b, n_k); f32 accumulator resident over the k (hidden) axis.
    # ReLU acts per hidden column, so tiling the hidden dim is an exact fusion.
    k = pl.program_id(1)

    @pl.when(k == 0)
    def _():
        acc_ref[...] = jnp.zeros_like(acc_ref)

    h = jnp.dot(x_ref[...], w1_ref[...], preferred_element_type=jnp.float32)
    h = jnp.maximum(h + b1_ref[...], 0.0)
    acc_ref[...] += jnp.dot(h.astype(w2_ref.dtype), w2_ref[...],
                            preferred_element_type=jnp.float32)

    @pl.when(k == pl.num_programs(1) - 1)
    def _():
        y = acc_ref[...] + b2_ref[...]
        sumsq = jnp.sum(y * y, axis=-1, keepdims=True)
        inv = jax.lax.rsqrt(jnp.maximum(sumsq, 1e-24))
        o_ref[...] = (y * inv).astype(o_ref.dtype)


# --------------------------------------------------------------------------- #
# Planning (per-chip tile sizes + path selection)
# --------------------------------------------------------------------------- #

def _plan(B, D, O, compute_dtype, out_dtype, force_k_tiled=False, force_tk=None):
    cap = _vmem_capacity_bytes()
    budget = int(cap * 0.85)                 # leave headroom below physical VMEM
    headroom = 8 * 1024 * 1024               # compiler-internal scratch slack
    cb = jnp.dtype(compute_dtype).itemsize
    ob = jnp.dtype(out_dtype).itemsize

    D_pad = _round_up(D, 128)
    O_pad = _round_up(O, 128)

    # Batch tile: multiple of 16 (bf16 sublane packing).  For B >= 128 force at
    # least two batch tiles so the "parallel" axis spans both v7x TensorCores.
    if B <= 128:
        tile_b = _round_up(max(B, 8), 16)
    else:
        tile_b = min(256, _round_up(-(-B // 2), 16))

    def resident_bytes(tb):
        return (2 * D_pad * D_pad * cb        # W1 (conservatively double-counted)
                + 2 * D_pad * O_pad * cb      # W2
                + 2 * tb * D_pad * cb         # x tile (double-buffered)
                + 2 * tb * O_pad * ob         # out tile (double-buffered)
                + 2 * (D_pad + O_pad) * 4)    # biases

    use_resident = (not force_k_tiled) and (
        resident_bytes(tile_b) + headroom <= budget)

    if use_resident:
        vmem_limit = int(min(budget, max(32 * 1024 * 1024,
                                         resident_bytes(tile_b) + headroom)))
        return dict(tile_b=tile_b, tk=D_pad, use_resident=True,
                    vmem_limit=vmem_limit, D_pad=D_pad, O_pad=O_pad)

    # k-tiled fallback: tk <= 512 on v7x (64 MiB), <= 1024 on v5e/v6e (128 MiB).
    max_tk = 1024 if cap >= 96 * 1024 * 1024 else 512
    if B >= 1024:
        # DMA-bound otherwise: bigger batch tile doubles MXU work per W1 slab.
        tile_b = min(512, _round_up(-(-B // 2), 16))
    if force_tk is not None:
        tk = force_tk
    else:
        tk = 128
        t = min(max_tk, D_pad)
        while t >= 128:
            if t % 128 == 0 and D_pad % t == 0:
                tk = t
                break
            t -= 128

    def ktiled_bytes(tb, tkk):
        return (2 * tb * D_pad * cb            # x tile
                + 2 * D_pad * tkk * cb         # W1 column slab
                + 2 * tkk * O_pad * cb         # W2 row slab
                + 2 * tb * O_pad * ob          # out tile
                + tb * O_pad * 4               # f32 accumulator scratch
                + 2 * (tkk + O_pad) * 4)       # bias slabs

    vmem_limit = int(min(budget, max(32 * 1024 * 1024,
                                     ktiled_bytes(tile_b, tk) + headroom)))
    return dict(tile_b=tile_b, tk=tk, use_resident=False,
                vmem_limit=vmem_limit, D_pad=D_pad, O_pad=O_pad)


# --------------------------------------------------------------------------- #
# Wrapper
# --------------------------------------------------------------------------- #

@functools.partial(jax.jit, static_argnames=(
    "tile_b", "tk", "use_resident", "vmem_limit", "compute_dtype",
    "D_pad", "O_pad"))
def _projection_call(feats, w1, b1, w2, b2, *, tile_b, tk, use_resident,
                     vmem_limit, compute_dtype, D_pad, O_pad):
    B, D = feats.shape
    O = w2.shape[1]
    out_dtype = feats.dtype

    # bf16 MXU inputs (f32 accumulation inside the kernel); biases stay f32.
    x = feats.astype(compute_dtype)
    w1c = w1.astype(compute_dtype)
    w2c = w2.astype(compute_dtype)
    b1c = b1.reshape(1, D).astype(jnp.float32)
    b2c = b2.reshape(1, O).astype(jnp.float32)

    # Zero-pad batch / embedding / output dims so every block is (16, 128)-aligned
    # and stores are lane-dense.  Zero columns contribute nothing to h, y, or the
    # row norms, so the math stays exact; padding is skipped when already aligned.
    B_pad = _round_up(B, tile_b)
    if B_pad != B or D_pad != D:
        x = jnp.pad(x, ((0, B_pad - B), (0, D_pad - D)))
    if D_pad != D:
        w1c = jnp.pad(w1c, ((0, D_pad - D), (0, D_pad - D)))
        b1c = jnp.pad(b1c, ((0, 0), (0, D_pad - D)))
        w2c = jnp.pad(w2c, ((0, D_pad - D), (0, 0)))
    if O_pad != O:
        w2c = jnp.pad(w2c, ((0, 0), (0, O_pad - O)))
        b2c = jnp.pad(b2c, ((0, 0), (0, O_pad - O)))

    n_b = B_pad // tile_b

    if use_resident:
        out = pl.pallas_call(
            _proj_head_resident_kernel,
            out_shape=jax.ShapeDtypeStruct((B_pad, O_pad), out_dtype),
            grid_spec=pl.GridSpec(
                grid=(n_b,),
                in_specs=[
                    pl.BlockSpec((tile_b, D_pad), lambda i: (i, 0)),   # x tile
                    pl.BlockSpec((D_pad, D_pad), lambda i: (0, 0)),    # W1 resident
                    pl.BlockSpec((1, D_pad), lambda i: (0, 0)),        # b1
                    pl.BlockSpec((D_pad, O_pad), lambda i: (0, 0)),    # W2 resident
                    pl.BlockSpec((1, O_pad), lambda i: (0, 0)),        # b2
                ],
                out_specs=pl.BlockSpec((tile_b, O_pad), lambda i: (i, 0)),
            ),
            compiler_params=pltpu.CompilerParams(
                dimension_semantics=("parallel",),
                vmem_limit_bytes=vmem_limit,
            ),
        )(x, w1c, b1c, w2c, b2c)
    else:
        n_k = D_pad // tk
        out = pl.pallas_call(
            _proj_head_ktiled_kernel,
            out_shape=jax.ShapeDtypeStruct((B_pad, O_pad), out_dtype),
            grid_spec=pl.GridSpec(
                grid=(n_b, n_k),
                in_specs=[
                    pl.BlockSpec((tile_b, D_pad), lambda i, k: (i, 0)),  # x (resident over k)
                    pl.BlockSpec((D_pad, tk), lambda i, k: (0, k)),      # W1 column slab
                    pl.BlockSpec((1, tk), lambda i, k: (0, k)),          # b1 slab
                    pl.BlockSpec((tk, O_pad), lambda i, k: (k, 0)),      # W2 row slab
                    pl.BlockSpec((1, O_pad), lambda i, k: (0, 0)),       # b2
                ],
                out_specs=pl.BlockSpec((tile_b, O_pad), lambda i, k: (i, 0)),
                scratch_shapes=[pltpu.VMEM((tile_b, O_pad), jnp.float32)],
            ),
            compiler_params=pltpu.CompilerParams(
                dimension_semantics=("parallel", "arbitrary"),
                vmem_limit_bytes=vmem_limit,
            ),
        )(x, w1c, b1c, w2c, b2c)

    if B_pad != B or O_pad != O:
        out = out[:B, :O]
    return out


def encoder_projection_forward(feats, w1, b1, w2, b2, *,
                               compute_dtype=jnp.bfloat16,
                               force_k_tiled=False, force_tk=None):
    """feats: [B, D] pooled backbone features; returns L2-normalized [B, O]."""
    B, D = feats.shape
    O = w2.shape[1]
    plan = _plan(B, D, O, compute_dtype, feats.dtype,
                 force_k_tiled=force_k_tiled, force_tk=force_tk)
    return _projection_call(feats, w1, b1, w2, b2,
                            compute_dtype=compute_dtype, **plan)


def _reference(feats, w1, b1, w2, b2):
    h = jnp.maximum(feats @ w1 + b1.reshape(1, -1), 0.0)
    y = h @ w2 + b2.reshape(1, -1)
    n = jnp.sqrt(jnp.sum(y * y, axis=1, keepdims=True))
    return y / jnp.maximum(n, 1e-12)


if __name__ == "__main__":
    # Small deterministic shapes consistent with the projection head:
    # embedding_dim = 512, output_dims = 128, batch = 30 (non-multiple of the
    # batch tile to exercise the pad/slice path).
    B, D, O = 30, 512, 128
    key = jax.random.PRNGKey(0)
    k_x, k_w1, k_b1, k_w2, k_b2 = jax.random.split(key, 5)

    feats = jax.random.normal(k_x, (B, D), dtype=jnp.float32)

    # Deterministic parameter init (uniform, fan-in scaled, like nn.Linear default).
    lim = 1.0 / jnp.sqrt(D)
    w1 = jax.random.uniform(k_w1, (D, D), jnp.float32, -lim, lim)
    b1 = jax.random.uniform(k_b1, (D,), jnp.float32, -lim, lim)
    w2 = jax.random.uniform(k_w2, (D, O), jnp.float32, -lim, lim)
    b2 = jax.random.uniform(k_b2, (O,), jnp.float32, -lim, lim)

    ref = _reference(feats, w1, b1, w2, b2)

    # Path 1: weight-resident kernel (the common case: D <= ~2048 bf16 on v7x,
    # up to ~4096 on v5e/v6e).
    out = jax.block_until_ready(encoder_projection_forward(feats, w1, b1, w2, b2))
    assert out.shape == (B, O)
    # bf16 MXU inputs with f32 accumulation -> tolerance loosened vs pure f32.
    assert jnp.allclose(out, ref, atol=3e-2, rtol=3e-2), "resident path mismatch"
    # Normalization runs in f32, so rows must be unit-norm to f32 precision.
    assert jnp.allclose(jnp.linalg.norm(out, axis=1), 1.0, atol=1e-4)

    # Path 2: hidden-dim-tiled fallback (what v7x uses for D >= 4096), exercised
    # here with a forced small tk so both kernels are compiled and validated.
    out_kt = jax.block_until_ready(
        encoder_projection_forward(feats, w1, b1, w2, b2,
                                   force_k_tiled=True, force_tk=256))
    assert out_kt.shape == (B, O)
    assert jnp.allclose(out_kt, ref, atol=3e-2, rtol=3e-2), "k-tiled path mismatch"
    assert jnp.allclose(jnp.linalg.norm(out_kt, axis=1), 1.0, atol=1e-4)

    print("KERNEL_OK")
</pallas_src>

<mosaic_0001>
module attributes {stable_mosaic.version = 11 : i64} {
  func.func @_proj_head_resident_kernel(%arg0: i32, %arg1: memref<32x512xbf16, #tpu.memory_space<vmem>>, %arg2: memref<512x512xbf16, #tpu.memory_space<vmem>>, %arg3: memref<1x512xf32, #tpu.memory_space<vmem>>, %arg4: memref<512x128xbf16, #tpu.memory_space<vmem>>, %arg5: memref<1x128xf32, #tpu.memory_space<vmem>>, %arg6: memref<32x128xf32, #tpu.memory_space<vmem>>) attributes {dimension_semantics = [#tpu.dimension_semantics<parallel>], iteration_bounds = array<i64: 1>, scalar_prefetch = 0 : i64, scratch_operands = 0 : i64, tpu.core_type = #tpu.core_type<tc>, window_params = [{transform_indices = @transform_0, window_bounds = array<i64: 32, 512>}, {pipeline_mode = #tpu.pipeline_mode<synchronous>, transform_indices = @transform_1, window_bounds = array<i64: 512, 512>}, {pipeline_mode = #tpu.pipeline_mode<synchronous>, transform_indices = @transform_2, window_bounds = array<i64: 1, 512>}, {pipeline_mode = #tpu.pipeline_mode<synchronous>, transform_indices = @transform_3, window_bounds = array<i64: 512, 128>}, {pipeline_mode = #tpu.pipeline_mode<synchronous>, transform_indices = @transform_4, window_bounds = array<i64: 1, 128>}, {transform_indices = @transform_5, window_bounds = array<i64: 32, 128>}]} {
    %c0 = arith.constant 0 : index
    %c0_0 = arith.constant 0 : index
    %0 = vector.load %arg1[%c0, %c0_0] : memref<32x512xbf16, #tpu.memory_space<vmem>>, vector<32x512xbf16>
    %c0_1 = arith.constant 0 : index
    %c0_2 = arith.constant 0 : index
    %1 = vector.load %arg2[%c0_1, %c0_2] : memref<512x512xbf16, #tpu.memory_space<vmem>>, vector<512x512xbf16>
    %cst = arith.constant dense<0.000000e+00> : vector<32x512xf32>
    %2 = tpu.matmul %0, %1, %cst {dimension_numbers = #tpu.dot_dimension_numbers<[1], [0], [0], [1], [0, 0, 1, 1], [], []>} : vector<32x512xbf16>, vector<512x512xbf16>, vector<32x512xf32> -> vector<32x512xf32>
    %c0_3 = arith.constant 0 : index
    %c0_4 = arith.constant 0 : index
    %3 = vector.load %arg3[%c0_3, %c0_4] : memref<1x512xf32, #tpu.memory_space<vmem>>, vector<1x512xf32>
    %4 = vector.broadcast %3 : vector<1x512xf32> to vector<32x512xf32>
    %5 = arith.addf %2, %4 : vector<32x512xf32>
    %cst_5 = arith.constant 0.000000e+00 : f32
    %6 = vector.broadcast %cst_5 : f32 to vector<32x512xf32>
    %7 = arith.maximumf %5, %6 : vector<32x512xf32>
    %8 = arith.truncf %7 : vector<32x512xf32> to vector<32x512xbf16>
    %c0_6 = arith.constant 0 : index
    %c0_7 = arith.constant 0 : index
    %9 = vector.load %arg4[%c0_6, %c0_7] : memref<512x128xbf16, #tpu.memory_space<vmem>>, vector<512x128xbf16>
    %cst_8 = arith.constant dense<0.000000e+00> : vector<32x128xf32>
    %10 = tpu.matmul %8, %9, %cst_8 {dimension_numbers = #tpu.dot_dimension_numbers<[1], [0], [0], [1], [0, 0, 1, 1], [], []>} : vector<32x512xbf16>, vector<512x128xbf16>, vector<32x128xf32> -> vector<32x128xf32>
    %c0_9 = arith.constant 0 : index
    %c0_10 = arith.constant 0 : index
    %11 = vector.load %arg5[%c0_9, %c0_10] : memref<1x128xf32, #tpu.memory_space<vmem>>, vector<1x128xf32>
    %12 = vector.broadcast %11 : vector<1x128xf32> to vector<32x128xf32>
    %13 = arith.addf %10, %12 : vector<32x128xf32>
    %14 = arith.mulf %13, %13 : vector<32x128xf32>
    %cst_11 = arith.constant dense<0.000000e+00> : vector<32xf32>
    %15 = vector.multi_reduction <add>, %14, %cst_11 [1] : vector<32x128xf32> to vector<32xf32>
    %16 = vector.shape_cast %15 : vector<32xf32> to vector<32x1xf32>
    %cst_12 = arith.constant 1.000000e-24 : f32
    %17 = vector.broadcast %cst_12 : f32 to vector<32x1xf32>
    %18 = arith.maximumf %16, %17 : vector<32x1xf32>
    %19 = math.rsqrt %18 : vector<32x1xf32>
    %20 = vector.broadcast %19 : vector<32x1xf32> to vector<32x128xf32>
    %21 = arith.mulf %13, %20 : vector<32x128xf32>
    %c0_13 = arith.constant 0 : index
    %c0_14 = arith.constant 0 : index
    %22 = vector.load %arg6[%c0_13, %c0_14] : memref<32x128xf32, #tpu.memory_space<vmem>>, vector<32x128xf32>
    tpu.vector_store %arg6[%c0_13, %c0_14], %21 {strides = array<i32>} : memref<32x128xf32, #tpu.memory_space<vmem>>, vector<32x128xf32>,
    return
  }
  func.func @transform_0(%arg0: i32) -> (i32, i32) {
    %c0_i32 = arith.constant 0 : i32
    %c0_i32_0 = arith.constant 0 : i32
    return %arg0, %c0_i32 : i32, i32
  }
  func.func @transform_1(%arg0: i32) -> (i32, i32) {
    %c0_i32 = arith.constant 0 : i32
    %c0_i32_0 = arith.constant 0 : i32
    %c0_i32_1 = arith.constant 0 : i32
    return %c0_i32, %c0_i32_0 : i32, i32
  }
  func.func @transform_2(%arg0: i32) -> (i32, i32) {
    %c0_i32 = arith.constant 0 : i32
    %c0_i32_0 = arith.constant 0 : i32
    %c0_i32_1 = arith.constant 0 : i32
    return %c0_i32, %c0_i32_0 : i32, i32
  }
  func.func @transform_3(%arg0: i32) -> (i32, i32) {
    %c0_i32 = arith.constant 0 : i32
    %c0_i32_0 = arith.constant 0 : i32
    %c0_i32_1 = arith.constant 0 : i32
    return %c0_i32, %c0_i32_0 : i32, i32
  }
  func.func @transform_4(%arg0: i32) -> (i32, i32) {
    %c0_i32 = arith.constant 0 : i32
    %c0_i32_0 = arith.constant 0 : i32
    %c0_i32_1 = arith.constant 0 : i32
    return %c0_i32, %c0_i32_0 : i32, i32
  }
  func.func @transform_5(%arg0: i32) -> (i32, i32) {
    %c0_i32 = arith.constant 0 : i32
    %c0_i32_0 = arith.constant 0 : i32
    return %arg0, %c0_i32 : i32, i32
  }
}

</mosaic_0001>

<bundles_post_ra>
// kernel: _projection_call.1
= control target key start
LH: loop header
LB: loop body
LE: loop exit
PB: predicated region body
PF: predicated region fallthrough
CT: control target
= control target key end

     0   :  { %s2584_s0 = inlined_call_operand.vmem [shape: bf16[32,512], index: 0, kind: input, shape index: {}]   ;;  %s2585_s1 = inlined_call_operand.vmem [shape: bf16[512,512], index: 1, kind: input, shape index: {}]   ;;  %s2586_s2 = inlined_call_operand.vmem [shape: f32[1,512], index: 2, kind: input, shape index: {}]   ;;  %s2587_s3 = inlined_call_operand.vmem [shape: bf16[512,128], index: 3, kind: input, shape index: {}]   ;;  %s2588_s4 = inlined_call_operand.vmem [shape: f32[1,128], index: 4, kind: input, shape index: {}]   ;;  %s2589_s5 = inlined_call_operand.hbm [shape: f32[32,128], index: 5, kind: output, shape index: {}]  }
   0x1   :  { %v1761_v0 = vld [vmem:[%s2585_s1 + $0x4] ss:$16 sps:$4 sm:$0xff]   ;;  %v1763_v1 = vld [vmem:[%s2585_s1 + $0xc] ss:$16 sps:$4 sm:$0xff]   ;;  %v1765_v2 = vld [vmem:[%s2585_s1] ss:$16 sps:$4 sm:$0xff]  }
   0x2   :  { %860 = vmatprep.subr.bf16.mxu0 %v1761_v0  ;;  %v1766_v3 = vld [vmem:[%s2585_s1 + $0x8] ss:$16 sps:$4 sm:$0xff]   ;;  %966 = vmatprep.subr.bf16.mxu1 %v1763_v1  ;;  %v1767_v4 = vld [vmem:[%s2585_s1 + $0x24] ss:$16 sps:$4 sm:$0xff]   ;;  %v1769_v5 = vld [vmem:[%s2585_s1 + $0x2c] ss:$16 sps:$4 sm:$0xff]  }
   0x3   :  { %861 = vmatpush1.bf16.msra.mxu0 %v1765_v2  ;;  %967 = vmatpush1.bf16.msra.mxu1 %v1766_v3  ;;  %v1771_v6 = vld [vmem:[%s2585_s1 + $0x20] ss:$16 sps:$4 sm:$0xff]   ;;  %v1772_v7 = vld [vmem:[%s2585_s1 + $0x28] ss:$16 sps:$4 sm:$0xff]   ;;  %v1773_v8 = vld [vmem:[%s2585_s1 + $0x44] ss:$16 sps:$4 sm:$0xff]  }
   0x4   :  { %862 = vmatprep.subr.bf16.mxu0 %v1767_v4  ;;  %968 = vmatprep.subr.bf16.mxu1 %v1769_v5  ;;  %v1775_v9 = vld [vmem:[%s2585_s1 + $0x4c] ss:$16 sps:$4 sm:$0xff]   ;;  %v1777_v10 = vld [vmem:[%s2585_s1 + $0x40] ss:$16 sps:$4 sm:$0xff]   ;;  %v1778_v11 = vld [vmem:[%s2585_s1 + $0x48] ss:$16 sps:$4 sm:$0xff]  }
   0x5   :  { %v1779_v12 = vld [vmem:[%s2585_s1 + $0x64] ss:$16 sps:$4 sm:$0xff]   ;;  %v1781_v13 = vld [vmem:[%s2585_s1 + $0x6c] ss:$16 sps:$4 sm:$0xff]   ;;  %v1783_v14 = vld [vmem:[%s2585_s1 + $0x60] ss:$16 sps:$4 sm:$0xff]  }
   0x6   :  { %v1784_v15 = vld [vmem:[%s2585_s1 + $0x68] ss:$16 sps:$4 sm:$0xff]   ;;  %v1785_v16 = vld [vmem:[%s2585_s1 + $0x84] ss:$16 sps:$4 sm:$0xff]   ;;  %v1787_v17 = vld [vmem:[%s2585_s1 + $0x8c] ss:$16 sps:$4 sm:$0xff]  }
   0x7   :  { %863 = vmatpush1.bf16.msra.mxu0 %v1771_v6  ;;  %969 = vmatpush1.bf16.msra.mxu1 %v1772_v7  ;;  %v1789_v18 = vld [vmem:[%s2585_s1 + $0x80] ss:$16 sps:$4 sm:$0xff]   ;;  %v1790_v19 = vld [vmem:[%s2585_s1 + $0x88] ss:$16 sps:$4 sm:$0xff]   ;;  %v1791_v20 = vld [vmem:[%s2585_s1 + $0xa4] ss:$16 sps:$4 sm:$0xff]  }
   0x8   :  { %864 = vmatprep.subr.bf16.mxu0 %v1773_v8  ;;  %970 = vmatprep.subr.bf16.mxu1 %v1775_v9  ;;  %v1793_v21 = vld [vmem:[%s2585_s1 + $0xac] ss:$16 sps:$4 sm:$0xff]   ;;  %v1795_v22 = vld [vmem:[%s2585_s1 + $0xa0] ss:$16 sps:$4 sm:$0xff]   ;;  %v1796_v23 = vld [vmem:[%s2585_s1 + $0xa8] ss:$16 sps:$4 sm:$0xff]  }
   0x9   :  { %v1797_v24 = vld [vmem:[%s2585_s1 + $0xc4] ss:$16 sps:$4 sm:$0xff]   ;;  %v1799_v25 = vld [vmem:[%s2585_s1 + $0xcc] ss:$16 sps:$4 sm:$0xff]   ;;  %v1801_v26 = vld [vmem:[%s2585_s1 + $0xc0] ss:$16 sps:$4 sm:$0xff]  }
   0xa   :  { %v1802_v27 = vld [vmem:[%s2585_s1 + $0xc8] ss:$16 sps:$4 sm:$0xff]   ;;  %v1803_v28 = vld [vmem:[%s2585_s1 + $0xe4] ss:$16 sps:$4 sm:$0xff]   ;;  %v1805_v29 = vld [vmem:[%s2585_s1 + $0xec] ss:$16 sps:$4 sm:$0xff]  }
   0xb   :  { %865 = vmatpush1.bf16.msra.mxu0 %v1777_v10  ;;  %971 = vmatpush1.bf16.msra.mxu1 %v1778_v11  ;;  %v1807_v30 = vld [vmem:[%s2585_s1 + $0xe0] ss:$16 sps:$4 sm:$0xff]   ;;  %v1808_v31 = vld [vmem:[%s2585_s1 + $0xe8] ss:$16 sps:$4 sm:$0xff]   ;;  %v1809_v32 = vld [vmem:[%s2585_s1 + $0x104] ss:$16 sps:$4 sm:$0xff]  }
   0xc   :  { %866 = vmatprep.subr.bf16.mxu0 %v1779_v12  ;;  %972 = vmatprep.subr.bf16.mxu1 %v1781_v13  ;;  %v1811_v33 = vld [vmem:[%s2585_s1 + $0x10c] ss:$16 sps:$4 sm:$0xff]   ;;  %v1813_v34 = vld [vmem:[%s2585_s1 + $0x100] ss:$16 sps:$4 sm:$0xff]   ;;  %v1814_v35 = vld [vmem:[%s2585_s1 + $0x108] ss:$16 sps:$4 sm:$0xff]  }
   0xd   :  { %v1815_v36 = vld [vmem:[%s2585_s1 + $0x124] ss:$16 sps:$4 sm:$0xff]   ;;  %v1817_v37 = vld [vmem:[%s2585_s1 + $0x12c] ss:$16 sps:$4 sm:$0xff]   ;;  %v1819_v38 = vld [vmem:[%s2585_s1 + $0x120] ss:$16 sps:$4 sm:$0xff]  }
   0xe   :  { %v1820_v39 = vld [vmem:[%s2585_s1 + $0x128] ss:$16 sps:$4 sm:$0xff]   ;;  %v1821_v40 = vld [vmem:[%s2585_s1 + $0x144] ss:$16 sps:$4 sm:$0xff]   ;;  %v1823_v41 = vld [vmem:[%s2585_s1 + $0x14c] ss:$16 sps:$4 sm:$0xff]  }
   0xf   :  { %867 = vmatpush1.bf16.msra.mxu0 %v1783_v14  ;;  %973 = vmatpush1.bf16.msra.mxu1 %v1784_v15  ;;  %v1825_v42 = vld [vmem:[%s2585_s1 + $0x140] ss:$16 sps:$4 sm:$0xff]   ;;  %v1826_v43 = vld [vmem:[%s2585_s1 + $0x148] ss:$16 sps:$4 sm:$0xff]   ;;  %v1827_v44 = vld [vmem:[%s2585_s1 + $0x164] ss:$16 sps:$4 sm:$0xff]  }
  0x10   :  { %868 = vmatprep.subr.bf16.mxu0 %v1785_v16  ;;  %974 = vmatprep.subr.bf16.mxu1 %v1787_v17  ;;  %v1829_v45 = vld [vmem:[%s2585_s1 + $0x16c] ss:$16 sps:$4 sm:$0xff]   ;;  %v1831_v46 = vld [vmem:[%s2585_s1 + $0x160] ss:$16 sps:$4 sm:$0xff]   ;;  %v1832_v47 = vld [vmem:[%s2585_s1 + $0x168] ss:$16 sps:$4 sm:$0xff]  }
  0x11   :  { %v1859_v48 = vld [vmem:[%s2584_s0 + $0x4] ss:$16 sps:$4 sm:$0xff]   ;;  %v1835_v50 = vld [vmem:[%s2585_s1 + $0x18c] ss:$16 sps:$4 sm:$0xff]   ;;  %v1837_v51 = vld [vmem:[%s2585_s1 + $0x180] ss:$16 sps:$4 sm:$0xff]  }
  0x12   :  { %v1833_v49 = vld [vmem:[%s2585_s1 + $0x184] ss:$16 sps:$4 sm:$0xff]   ;;  %892 = vmatprep.mubr.bf16.mxu0 %v1859_v48  ;;  %998 = vmatprep.mubr.bf16.mxu1 %v1859_v48  ;;  %v1838_v52 = vld [vmem:[%s2585_s1 + $0x188] ss:$16 sps:$4 sm:$0xff]   ;;  %v1841_v54 = vld [vmem:[%s2585_s1 + $0x1ac] ss:$16 sps:$4 sm:$0xff]  }
  0x13   :  { %869 = vmatpush1.bf16.msra.mxu0 %v1789_v18  ;;  %975 = vmatpush1.bf16.msra.mxu1 %v1790_v19  ;;  %v1839_v53 = vld [vmem:[%s2585_s1 + $0x1a4] ss:$16 sps:$4 sm:$0xff]   ;;  %v1843_v55 = vld [vmem:[%s2585_s1 + $0x1a0] ss:$16 sps:$4 sm:$0xff]   ;;  %v1844_v56 = vld [vmem:[%s2585_s1 + $0x1a8] ss:$16 sps:$4 sm:$0xff]  }
  0x14   :  { %870 = vmatprep.subr.bf16.mxu0 %v1791_v20  ;;  %976 = vmatprep.subr.bf16.mxu1 %v1793_v21  ;;  %v1845_v57 = vld [vmem:[%s2585_s1 + $0x1c4] ss:$16 sps:$4 sm:$0xff]   ;;  %v1847_v58 = vld [vmem:[%s2585_s1 + $0x1cc] ss:$16 sps:$4 sm:$0xff]   ;;  %v1849_v59 = vld [vmem:[%s2585_s1 + $0x1c0] ss:$16 sps:$4 sm:$0xff]  }
  0x15   :  { %v1850_v60 = vld [vmem:[%s2585_s1 + $0x1c8] ss:$16 sps:$4 sm:$0xff]   ;;  %v1851_v61 = vld [vmem:[%s2585_s1 + $0x1e4] ss:$16 sps:$4 sm:$0xff]   ;;  %v1853_v62 = vld [vmem:[%s2585_s1 + $0x1ec] ss:$16 sps:$4 sm:$0xff]  }
  0x16   :  { %v1855_v63 = vld [vmem:[%s2585_s1 + $0x1e0] ss:$16 sps:$4 sm:$0xff]   ;;  %v1856_v0 = vld [vmem:[%s2585_s1 + $0x1e8] ss:$16 sps:$4 sm:$0xff]   ;;  %v1862_v1 = vld [vmem:[%s2585_s1 + $0x204] ss:$16 sps:$4 sm:$0xff]  }
  0x17   :  { %871 = vmatpush1.bf16.msra.mxu0 %v1795_v22  ;;  %977 = vmatpush1.bf16.msra.mxu1 %v1796_v23  ;;  %v1865_v2 = vld [vmem:[%s2585_s1 + $0x20c] ss:$16 sps:$4 sm:$0xff]   ;;  %v1857_v3 = vld [vmem:[%s2584_s0] ss:$16 sps:$4 sm:$0xff]   ;;  %v1863_v5 = vld [vmem:[%s2585_s1 + $0x208] ss:$16 sps:$4 sm:$0xff]  }
  0x18   :  { %872 = vmatprep.subr.bf16.mxu0 %v1797_v24  ;;  %978 = vmatprep.subr.bf16.mxu1 %v1799_v25  ;;  %v1860_v4 = vld [vmem:[%s2585_s1 + $0x200] ss:$16 sps:$4 sm:$0xff]   ;;  %v1868_v6 = vld [vmem:[%s2585_s1 + $0x224] ss:$16 sps:$4 sm:$0xff]   ;;  %v1871_v7 = vld [vmem:[%s2585_s1 + $0x22c] ss:$16 sps:$4 sm:$0xff]  }
  0x19   :  { %v1866_v8 = vld [vmem:[%s2585_s1 + $0x220] ss:$16 sps:$4 sm:$0xff]   ;;  %v1869_v9 = vld [vmem:[%s2585_s1 + $0x228] ss:$16 sps:$4 sm:$0xff]   ;;  %v1874_v10 = vld [vmem:[%s2585_s1 + $0x244] ss:$16 sps:$4 sm:$0xff]  }
  0x1a   :  { %v1877_v11 = vld [vmem:[%s2585_s1 + $0x24c] ss:$16 sps:$4 sm:$0xff]   ;;  %v1872_v12 = vld [vmem:[%s2585_s1 + $0x240] ss:$16 sps:$4 sm:$0xff]   ;;  %v1875_v13 = vld [vmem:[%s2585_s1 + $0x248] ss:$16 sps:$4 sm:$0xff]  }
  0x1b   :  { %873 = vmatpush1.bf16.msra.mxu0 %v1801_v26  ;;  %979 = vmatpush1.bf16.msra.mxu1 %v1802_v27  ;;  %v1880_v14 = vld [vmem:[%s2585_s1 + $0x264] ss:$16 sps:$4 sm:$0xff]   ;;  %v1883_v15 = vld [vmem:[%s2585_s1 + $0x26c] ss:$16 sps:$4 sm:$0xff]   ;;  %v1878_v16 = vld [vmem:[%s2585_s1 + $0x260] ss:$16 sps:$4 sm:$0xff]  }
  0x1c   :  { %874 = vmatprep.subr.bf16.mxu0 %v1803_v28  ;;  %980 = vmatprep.subr.bf16.mxu1 %v1805_v29  ;;  %v1881_v17 = vld [vmem:[%s2585_s1 + $0x268] ss:$16 sps:$4 sm:$0xff]   ;;  %v1886_v18 = vld [vmem:[%s2585_s1 + $0x284] ss:$16 sps:$4 sm:$0xff]   ;;  %v1889_v19 = vld [vmem:[%s2585_s1 + $0x28c] ss:$16 sps:$4 sm:$0xff]  }
  0x1d   :  { %v1884_v20 = vld [vmem:[%s2585_s1 + $0x280] ss:$16 sps:$4 sm:$0xff]   ;;  %v1887_v21 = vld [vmem:[%s2585_s1 + $0x288] ss:$16 sps:$4 sm:$0xff]   ;;  %v1892_v22 = vld [vmem:[%s2585_s1 + $0x2a4] ss:$16 sps:$4 sm:$0xff]  }
  0x1e   :  { %v1895_v23 = vld [vmem:[%s2585_s1 + $0x2ac] ss:$16 sps:$4 sm:$0xff]   ;;  %v1890_v24 = vld [vmem:[%s2585_s1 + $0x2a0] ss:$16 sps:$4 sm:$0xff]   ;;  %v1944_v25 = vld [vmem:[%s2584_s0 + $0x24] ss:$16 sps:$4 sm:$0xff]  }
  0x1f   :  { %875 = vmatpush1.bf16.msra.mxu0 %v1807_v30  ;;  %981 = vmatpush1.bf16.msra.mxu1 %v1808_v31  ;;  %v1893_v26 = vld [vmem:[%s2585_s1 + $0x2a8] ss:$16 sps:$4 sm:$0xff]   ;;  %v1946_v27 = vld [vmem:[%s2584_s0 + $0x20] ss:$16 sps:$4 sm:$0xff]   ;;  %v1898_v28 = vld [vmem:[%s2585_s1 + $0x2c4] ss:$16 sps:$4 sm:$0xff]  }
  0x20   :  { %876 = vmatprep.subr.bf16.mxu0 %v1809_v32  ;;  %982 = vmatprep.subr.bf16.mxu1 %v1811_v33  ;;  %v1901_v29 = vld [vmem:[%s2585_s1 + $0x2cc] ss:$16 sps:$4 sm:$0xff]   ;;  %v1896_v30 = vld [vmem:[%s2585_s1 + $0x2c0] ss:$16 sps:$4 sm:$0xff]   ;;  %v1899_v31 = vld [vmem:[%s2585_s1 + $0x2c8] ss:$16 sps:$4 sm:$0xff]  }
  0x21   :  { %v1904_v32 = vld [vmem:[%s2585_s1 + $0x2e4] ss:$16 sps:$4 sm:$0xff]   ;;  %v1907_v33 = vld [vmem:[%s2585_s1 + $0x2ec] ss:$16 sps:$4 sm:$0xff]   ;;  %v1923_v48 = vld [vmem:[%s2585_s1 + $0x348] ss:$16 sps:$4 sm:$0xff]  }
  0x23   :  { %877 = vmatpush1.bf16.msra.mxu0 %v1813_v34  ;;  %983 = vmatpush1.bf16.msra.mxu1 %v1814_v35  ;;  %v1961_v34 = vld [vmem:[%s2584_s0 + $0xc] ss:$16 sps:$4 sm:$0xff]   ;;  %v1902_v35 = vld [vmem:[%s2585_s1 + $0x2e0] ss:$16 sps:$4 sm:$0xff]  }
  0x24   :  { %878 = vmatprep.subr.bf16.mxu0 %v1815_v36  ;;  %984 = vmatprep.subr.bf16.mxu1 %v1817_v37  ;;  %v1905_v36 = vld [vmem:[%s2585_s1 + $0x2e8] ss:$16 sps:$4 sm:$0xff]   ;;  %v1910_v37 = vld [vmem:[%s2585_s1 + $0x304] ss:$16 sps:$4 sm:$0xff]  }
  0x27   :  { %879 = vmatpush1.bf16.msra.mxu0 %v1819_v38  ;;  %985 = vmatpush1.bf16.msra.mxu1 %v1820_v39  ;;  %v1913_v38 = vld [vmem:[%s2585_s1 + $0x30c] ss:$16 sps:$4 sm:$0xff]   ;;  %v1908_v39 = vld [vmem:[%s2585_s1 + $0x300] ss:$16 sps:$4 sm:$0xff]  }
  0x28   :  { %880 = vmatprep.subr.bf16.mxu0 %v1821_v40  ;;  %986 = vmatprep.subr.bf16.mxu1 %v1823_v41  ;;  %v1911_v40 = vld [vmem:[%s2585_s1 + $0x308] ss:$16 sps:$4 sm:$0xff]   ;;  %v1916_v41 = vld [vmem:[%s2585_s1 + $0x324] ss:$16 sps:$4 sm:$0xff]  }
  0x2b   :  { %881 = vmatpush1.bf16.msra.mxu0 %v1825_v42  ;;  %987 = vmatpush1.bf16.msra.mxu1 %v1826_v43  ;;  %v1919_v42 = vld [vmem:[%s2585_s1 + $0x32c] ss:$16 sps:$4 sm:$0xff]   ;;  %v1914_v43 = vld [vmem:[%s2585_s1 + $0x320] ss:$16 sps:$4 sm:$0xff]  }
  0x2c   :  { %882 = vmatprep.subr.bf16.mxu0 %v1827_v44  ;;  %988 = vmatprep.subr.bf16.mxu1 %v1829_v45  ;;  %v1917_v44 = vld [vmem:[%s2585_s1 + $0x328] ss:$16 sps:$4 sm:$0xff]   ;;  %v1922_v45 = vld [vmem:[%s2585_s1 + $0x344] ss:$16 sps:$4 sm:$0xff]  }
  0x2f   :  { %883 = vmatpush1.bf16.msra.mxu0 %v1831_v46  ;;  %989 = vmatpush1.bf16.msra.mxu1 %v1832_v47  ;;  %v1925_v46 = vld [vmem:[%s2585_s1 + $0x34c] ss:$16 sps:$4 sm:$0xff]   ;;  %v1920_v47 = vld [vmem:[%s2585_s1 + $0x340] ss:$16 sps:$4 sm:$0xff]  }
  0x30   :  { %884 = vmatprep.subr.bf16.mxu0 %v1833_v49  ;;  %990 = vmatprep.subr.bf16.mxu1 %v1835_v50  ;;  %v1928_v49 = vld [vmem:[%s2585_s1 + $0x364] ss:$16 sps:$4 sm:$0xff]   ;;  %v1931_v50 = vld [vmem:[%s2585_s1 + $0x36c] ss:$16 sps:$4 sm:$0xff]  }
  0x33   :  { %885 = vmatpush1.bf16.msra.mxu0 %v1837_v51  ;;  %991 = vmatpush1.bf16.msra.mxu1 %v1838_v52  ;;  %v1926_v51 = vld [vmem:[%s2585_s1 + $0x360] ss:$16 sps:$4 sm:$0xff]   ;;  %v1929_v52 = vld [vmem:[%s2585_s1 + $0x368] ss:$16 sps:$4 sm:$0xff]  }
  0x34   :  { %886 = vmatprep.subr.bf16.mxu0 %v1839_v53  ;;  %992 = vmatprep.subr.bf16.mxu1 %v1841_v54  ;;  %v1934_v53 = vld [vmem:[%s2585_s1 + $0x384] ss:$16 sps:$4 sm:$0xff]   ;;  %v1937_v54 = vld [vmem:[%s2585_s1 + $0x38c] ss:$16 sps:$4 sm:$0xff]  }
  0x37   :  { %887 = vmatpush1.bf16.msra.mxu0 %v1843_v55  ;;  %993 = vmatpush1.bf16.msra.mxu1 %v1844_v56  ;;  %v1932_v55 = vld [vmem:[%s2585_s1 + $0x380] ss:$16 sps:$4 sm:$0xff]   ;;  %v1935_v56 = vld [vmem:[%s2585_s1 + $0x388] ss:$16 sps:$4 sm:$0xff]  }
  0x38   :  { %888 = vmatprep.subr.bf16.mxu0 %v1845_v57  ;;  %994 = vmatprep.subr.bf16.mxu1 %v1847_v58  ;;  %v1940_v57 = vld [vmem:[%s2585_s1 + $0x3a4] ss:$16 sps:$4 sm:$0xff]   ;;  %v1943_v58 = vld [vmem:[%s2585_s1 + $0x3ac] ss:$16 sps:$4 sm:$0xff]  }
  0x3b   :  { %889 = vmatpush1.bf16.msra.mxu0 %v1849_v59  ;;  %995 = vmatpush1.bf16.msra.mxu1 %v1850_v60  ;;  %v1938_v59 = vld [vmem:[%s2585_s1 + $0x3a0] ss:$16 sps:$4 sm:$0xff]   ;;  %v1941_v60 = vld [vmem:[%s2585_s1 + $0x3a8] ss:$16 sps:$4 sm:$0xff]  }
  0x3c   :  { %890 = vmatprep.subr.bf16.mxu0 %v1851_v61  ;;  %996 = vmatprep.subr.bf16.mxu1 %v1853_v62  ;;  %v1949_v61 = vld [vmem:[%s2585_s1 + $0x3c4] ss:$16 sps:$4 sm:$0xff]   ;;  %v1952_v62 = vld [vmem:[%s2585_s1 + $0x3cc] ss:$16 sps:$4 sm:$0xff]  }
  0x3f   :  { %891 = vmatpush1.bf16.msra.mxu0 %v1855_v63  ;;  %997 = vmatpush1.bf16.msra.mxu1 %v1856_v0 }
  0x40   :  { %913 = vmatprep.subr.bf16.mxu0 %v1862_v1  ;;  %1019 = vmatprep.subr.bf16.mxu1 %v1865_v2 }
  0x42   :  { %893 = vmatmul.mubr.bf16.vlgmr.msra.gmra.mrb[0].mxu0 %v1857_v3  ;;  %999 = vmatmul.mubr.bf16.vlgmr.msra.gmra.mrb[0].mxu1 %v1857_v3 }
  0x43   :  { %914 = vmatpush1.bf16.msra.mxu0 %v1860_v4  ;;  %1020 = vmatpush1.bf16.msra.mxu1 %v1863_v5 }
  0x44   :  { %915 = vmatprep.subr.bf16.mxu0 %v1868_v6  ;;  %1021 = vmatprep.subr.bf16.mxu1 %v1871_v7 }
  0x45   :  { %902 = vmatprep.mubr.bf16.mxu0 %v1944_v25  ;;  %1008 = vmatprep.mubr.bf16.mxu1 %v1944_v25 }
  0x47   :  { %916 = vmatpush1.bf16.msra.mxu0 %v1866_v8  ;;  %1022 = vmatpush1.bf16.msra.mxu1 %v1869_v9 }
  0x48   :  { %917 = vmatprep.subr.bf16.mxu0 %v1874_v10  ;;  %1023 = vmatprep.subr.bf16.mxu1 %v1877_v11 }
  0x4a   :  { %903 = vmatmul.mubr.bf16.gmra.mrb[4].mxu0 %v1946_v27  ;;  %1009 = vmatmul.mubr.bf16.gmra.mrb[4].mxu1 %v1946_v27 }
  0x4b   :  { %918 = vmatpush1.bf16.msra.mxu0 %v1872_v12  ;;  %1024 = vmatpush1.bf16.msra.mxu1 %v1875_v13 }
  0x4c   :  { %919 = vmatprep.subr.bf16.mxu0 %v1880_v14  ;;  %1025 = vmatprep.subr.bf16.mxu1 %v1883_v15 }
  0x4d   :  { %945 = vmatprep.mubr.bf16.mxu0 %v1961_v34  ;;  %1051 = vmatprep.mubr.bf16.mxu1 %v1961_v34 }
  0x4f   :  { %920 = vmatpush1.bf16.msra.mxu0 %v1878_v16  ;;  %1026 = vmatpush1.bf16.msra.mxu1 %v1881_v17 }
  0x50   :  { %921 = vmatprep.subr.bf16.mxu0 %v1886_v18  ;;  %1027 = vmatprep.subr.bf16.mxu1 %v1889_v19 }
  0x53   :  { %922 = vmatpush1.bf16.msra.mxu0 %v1884_v20  ;;  %1028 = vmatpush1.bf16.msra.mxu1 %v1887_v21 }
  0x54   :  { %923 = vmatprep.subr.bf16.mxu0 %v1892_v22  ;;  %1029 = vmatprep.subr.bf16.mxu1 %v1895_v23 }
  0x57   :  { %924 = vmatpush1.bf16.msra.mxu0 %v1890_v24  ;;  %1030 = vmatpush1.bf16.msra.mxu1 %v1893_v26 }
  0x58   :  { %925 = vmatprep.subr.bf16.mxu0 %v1898_v28  ;;  %1031 = vmatprep.subr.bf16.mxu1 %v1901_v29 }
  0x5b   :  { %926 = vmatpush1.bf16.msra.mxu0 %v1896_v30  ;;  %1032 = vmatpush1.bf16.msra.mxu1 %v1899_v31 }
  0x5c   :  { %927 = vmatprep.subr.bf16.mxu0 %v1904_v32  ;;  %1033 = vmatprep.subr.bf16.mxu1 %v1907_v33 }
  0x5f   :  { %928 = vmatpush1.bf16.msra.mxu0 %v1902_v35  ;;  %1034 = vmatpush1.bf16.msra.mxu1 %v1905_v36 }
  0x60   :  { %929 = vmatprep.subr.bf16.mxu0 %v1910_v37  ;;  %1035 = vmatprep.subr.bf16.mxu1 %v1913_v38 }
  0x63   :  { %930 = vmatpush1.bf16.msra.mxu0 %v1908_v39  ;;  %1036 = vmatpush1.bf16.msra.mxu1 %v1911_v40 }
  0x64   :  { %931 = vmatprep.subr.bf16.mxu0 %v1916_v41  ;;  %1037 = vmatprep.subr.bf16.mxu1 %v1919_v42 }
  0x67   :  { %932 = vmatpush1.bf16.msra.mxu0 %v1914_v43  ;;  %1038 = vmatpush1.bf16.msra.mxu1 %v1917_v44 }
  0x68   :  { %933 = vmatprep.subr.bf16.mxu0 %v1922_v45  ;;  %1039 = vmatprep.subr.bf16.mxu1 %v1925_v46 }
  0x6b   :  { %934 = vmatpush1.bf16.msra.mxu0 %v1920_v47  ;;  %1040 = vmatpush1.bf16.msra.mxu1 %v1923_v48 }
  0x6c   :  { %935 = vmatprep.subr.bf16.mxu0 %v1928_v49  ;;  %1041 = vmatprep.subr.bf16.mxu1 %v1931_v50 }
  0x6f   :  { %936 = vmatpush1.bf16.msra.mxu0 %v1926_v51  ;;  %1042 = vmatpush1.bf16.msra.mxu1 %v1929_v52 }
  0x70   :  { %937 = vmatprep.subr.bf16.mxu0 %v1934_v53  ;;  %1043 = vmatprep.subr.bf16.mxu1 %v1937_v54 }
  0x73   :  { %938 = vmatpush1.bf16.msra.mxu0 %v1932_v55  ;;  %1044 = vmatpush1.bf16.msra.mxu1 %v1935_v56 }
  0x74   :  { %939 = vmatprep.subr.bf16.mxu0 %v1940_v57  ;;  %1045 = vmatprep.subr.bf16.mxu1 %v1943_v58 }
  0x75   :  { %10 = vsyncpa [#allocation3], 0  ;;  %v1947_v63 = vld [vmem:[%s2585_s1 + $0x3c0] ss:$16 sps:$4 sm:$0xff]   ;;  %v1950_v0 = vld [vmem:[%s2585_s1 + $0x3c8] ss:$16 sps:$4 sm:$0xff]   ;;  %v160_v40 = vlaneseq }
  0x76   :  { %v1955_v1 = vld [vmem:[%s2585_s1 + $0x3e4] ss:$16 sps:$4 sm:$0xff]   ;;  %v1958_v2 = vld [vmem:[%s2585_s1 + $0x3ec] ss:$16 sps:$4 sm:$0xff]   ;;  %v1953_v3 = vld [vmem:[%s2585_s1 + $0x3e0] ss:$16 sps:$4 sm:$0xff]  }
  0x77   :  { %940 = vmatpush1.bf16.msra.mxu0 %v1938_v59  ;;  %1046 = vmatpush1.bf16.msra.mxu1 %v1941_v60  ;;  %v1956_v4 = vld [vmem:[%s2585_s1 + $0x3e8] ss:$16 sps:$4 sm:$0xff]   ;;  %v1965_v5 = vld [vmem:[%s2587_s3 + $0x40] sm:$0xff]   ;;  %v1962_v8 = vld [vmem:[%s2584_s0 + $0x2c] ss:$16 sps:$4 sm:$0xff]   ;;  %v161_v41 = vshrl.u32 %v160_v40, 7 }
  0x78   :  { %941 = vmatprep.subr.bf16.mxu0 %v1949_v61  ;;  %1047 = vmatprep.subr.bf16.mxu1 %v1952_v62  ;;  %v1966_v6 = vld [vmem:[%s2587_s3 + $0xc0] sm:$0xff]   ;;  %v1959_v7 = vld [vmem:[%s2584_s0 + $0x8] ss:$16 sps:$4 sm:$0xff]   ;;  %v1973_v15 = vld [vmem:[%s2587_s3 + $0x50] sm:$0xff]  }
  0x79   :  { %v1967_v9 = vld [vmem:[%s2587_s3] sm:$0xff]   ;;  %v1969_v11 = vld [vmem:[%s2587_s3 + $0x48] sm:$0xff]   ;;  %v1974_v16 = vld [vmem:[%s2587_s3 + $0xd0] sm:$0xff]   ;;  %v162_v42 = vsub.s32 0, %v161_v41  ;;  %v170_v43 = vsub.s32 2, %v161_v41  ;;  %v166_v45 = vsub.s32 1, %v161_v41 }
  0x7a   :  { %v1968_v10 = vld [vmem:[%s2587_s3 + $0x80] sm:$0xff]   ;;  %v1970_v12 = vld [vmem:[%s2587_s3 + $0xc8] sm:$0xff]   ;;  %v1975_v18 = vld [vmem:[%s2587_s3 + $0x10] sm:$0xff]   ;;  %v174_v46 = vsub.s32 3, %v161_v41 }
  0x7b   :  { %942 = vmatpush1.bf16.msra.mxu0 %v1947_v63  ;;  %1048 = vmatpush1.bf16.msra.mxu1 %v1950_v0  ;;  %v1971_v13 = vld [vmem:[%s2587_s3 + $0x8] sm:$0xff]   ;;  %v1976_v19 = vld [vmem:[%s2587_s3 + $0x90] sm:$0xff]   ;;  %v1977_v20 = vld [vmem:[%s2587_s3 + $0x58] sm:$0xff]  }
  0x7c   :  { %943 = vmatprep.subr.bf16.mxu0 %v1955_v1  ;;  %1049 = vmatprep.subr.bf16.mxu1 %v1958_v2  ;;  %v1972_v14 = vld [vmem:[%s2587_s3 + $0x88] sm:$0xff]   ;;  %v1978_v21 = vld [vmem:[%s2587_s3 + $0xd8] sm:$0xff]   ;;  %v1981_v24 = vld [vmem:[%s2587_s3 + $0x60] sm:$0xff]  }
  0x7d   :  { %v1964_v17 = vld [vmem:[%s2584_s0 + $0x28] ss:$16 sps:$4 sm:$0xff]   ;;  %v1982_v25 = vld [vmem:[%s2587_s3 + $0xe0] sm:$0xff]   ;;  %v1989_v32 = vld [vmem:[%s2587_s3 + $0x70] sm:$0xff]  }
  0x7e   :  { %v1979_v22 = vld [vmem:[%s2587_s3 + $0x18] sm:$0xff]   ;;  %v1983_v26 = vld [vmem:[%s2587_s3 + $0x20] sm:$0xff]   ;;  %v1985_v28 = vld [vmem:[%s2587_s3 + $0x68] sm:$0xff]  }
  0x7f   :  { %944 = vmatpush1.bf16.msra.mxu0 %v1953_v3  ;;  %1050 = vmatpush1.bf16.msra.mxu1 %v1956_v4  ;;  %v1980_v23 = vld [vmem:[%s2587_s3 + $0x98] sm:$0xff]   ;;  %v1984_v27 = vld [vmem:[%s2587_s3 + $0xa0] sm:$0xff]   ;;  %v1986_v29 = vld [vmem:[%s2587_s3 + $0xe8] sm:$0xff]  }
  0x80   :  { %1670 = vmatprep.subr.bf16.mxu0 %v1965_v5  ;;  %1698 = vmatprep.subr.bf16.mxu1 %v1966_v6  ;;  %v1987_v30 = vld [vmem:[%s2587_s3 + $0x28] sm:$0xff]   ;;  %v1990_v33 = vld [vmem:[%s2587_s3 + $0xf0] sm:$0xff]   ;;  %v1993_v36 = vld [vmem:[%s2587_s3 + $0x78] sm:$0xff]  }
  0x81   :  { %v1988_v31 = vld [vmem:[%s2587_s3 + $0xa8] sm:$0xff]   ;;  %v1991_v34 = vld [vmem:[%s2587_s3 + $0x30] sm:$0xff]   ;;  %v1994_v37 = vld [vmem:[%s2587_s3 + $0xf8] sm:$0xff]  }
  0x82   :  { %946 = vmatmul.mubr.bf16.vlgmr.msra.gmra.mrb[0].mxu0 %v1959_v7  ;;  %1052 = vmatmul.mubr.bf16.vlgmr.msra.gmra.mrb[0].mxu1 %v1959_v7  ;;  %v1992_v35 = vld [vmem:[%s2587_s3 + $0xb0] sm:$0xff]   ;;  %v1995_v38 = vld [vmem:[%s2587_s3 + $0x38] sm:$0xff]   ;;  %v158_v44 = vld [vmem:[%s2586_s2] sm:$0xf] }
  0x83   :  { %955 = vmatprep.mubr.bf16.mxu0 %v1962_v8  ;;  %1061 = vmatprep.mubr.bf16.mxu1 %v1962_v8  ;;  %v1996_v39 = vld [vmem:[%s2587_s3 + $0xb8] sm:$0xff]   ;;  %v163_v47 = vrot.slane %v158_v44, %v162_v42  ;;  %v171_v48 = vrot.slane %v158_v44, %v170_v43  ;;  %v167_v49 = vrot.slane %v158_v44, %v166_v45  ;;  %v1637_v45 = vld [vmem:[%s2588_s4] ss:$0 sm:$0xff]  ;;  %s2029_s4 = smov [#allocation2]  }
  0x84   :  { %1671 = vmatpush3.bf16.msra.mxu0 %v1967_v9  ;;  %1699 = vmatpush3.bf16.msra.mxu1 %v1968_v10  ;;  %v175_v50 = vrot.slane %v158_v44, %v174_v46  ;;  %s1490_s26 = sshll.u32 %s2029_s4, 4  ;;  %s1491_s26 = int_to_ptr.vmem [resolvable:$true] %s1490_s26 }
  0x85   :  { %1672 = vmatprep.subr.bf16.mxu0 %v1969_v11  ;;  %1700 = vmatprep.subr.bf16.mxu1 %v1970_v12  ;;  %s2005_s27 = scalar_lea.vmem %s1491_s26, 512  ;;  %p2010_p1 = scmp.lt.s32.totalorder %s1491_s26, %s1491_s26 }
  0x86   :  { %p2006_p0 = scmp.ne.s32.totalorder %s1491_s26, %s2005_s27  ;;  %p2011_p2 = scmp.lt.s32.totalorder %s2005_s27, %s2005_s27 }
  0x88   :  { %1673 = vmatpush3.bf16.msra.mxu0 %v1971_v13  ;;  %1701 = vmatpush3.bf16.msra.mxu1 %v1972_v14  ;;  %p2012_p3 = por %p2011_p2, %p2010_p1 }
  0x89   :  { %1674 = vmatprep.subr.bf16.mxu0 %v1973_v15  ;;  %1702 = vmatprep.subr.bf16.mxu1 %v1974_v16 }
  0x8a   :  { %956 = vmatmul.mubr.bf16.gmra.mrb[4].mxu0 %v1964_v17  ;;  %1062 = vmatmul.mubr.bf16.gmra.mrb[4].mxu1 %v1964_v17  ;;  %p2013_p4 = pnand %p2012_p3, %p2006_p0 }
  0x8c   :  { %1675 = vmatpush3.bf16.msra.mxu0 %v1975_v18  ;;  %1703 = vmatpush3.bf16.msra.mxu1 %v1976_v19 }
  0x8d   :  { %1676 = vmatprep.subr.bf16.mxu0 %v1977_v20  ;;  %1704 = vmatprep.subr.bf16.mxu1 %v1978_v21 }
  0x90   :  { %1677 = vmatpush3.bf16.msra.mxu0 %v1979_v22  ;;  %1705 = vmatpush3.bf16.msra.mxu1 %v1980_v23 }
  0x91   :  { %1678 = vmatprep.subr.bf16.mxu0 %v1981_v24  ;;  %1706 = vmatprep.subr.bf16.mxu1 %v1982_v25 }
  0x94   :  { %1679 = vmatpush3.bf16.msra.mxu0 %v1983_v26  ;;  %1707 = vmatpush3.bf16.msra.mxu1 %v1984_v27 }
  0x95   :  { %1680 = vmatprep.subr.bf16.mxu0 %v1985_v28  ;;  %1708 = vmatprep.subr.bf16.mxu1 %v1986_v29 }
  0x98   :  { %1681 = vmatpush3.bf16.msra.mxu0 %v1987_v30  ;;  %1709 = vmatpush3.bf16.msra.mxu1 %v1988_v31 }
  0x99   :  { %1682 = vmatprep.subr.bf16.mxu0 %v1989_v32  ;;  %1710 = vmatprep.subr.bf16.mxu1 %v1990_v33 }
  0x9c   :  { %1683 = vmatpush3.bf16.msra.mxu0 %v1991_v34  ;;  %1711 = vmatpush3.bf16.msra.mxu1 %v1992_v35 }
  0x9d   :  { %1684 = vmatprep.subr.bf16.mxu0 %v1993_v36  ;;  %1712 = vmatprep.subr.bf16.mxu1 %v1994_v37 }
  0xa0   :  { %1685 = vmatpush3.bf16.msra.mxu0 %v1995_v38  ;;  %1713 = vmatpush3.bf16.msra.mxu1 %v1996_v39 }
 0x155   :  { %v947_v51 = vpop.f32.mrb[0].mxu0  ;;  %v1053_v52 = vpop.f32.mrb[0].mxu1 }
 0x156   :  { %v1726_v53 = vadd.f32 %v947_v51, %v163_v47  ;;  %v1734_v54 = vadd.f32 %v1053_v52, %v171_v48  ;;  %v949_v55 = vpop.f32.mrb[1].mxu0  ;;  %v1055_v56 = vpop.f32.mrb[1].mxu1 }
 0x157   :  { %v1727_v57 = vadd.f32 %v949_v55, %v167_v49  ;;  %v1735_v58 = vadd.f32 %v1055_v56, %v175_v50  ;;  %v951_v59 = vpop.f32.mrb[2].mxu0  ;;  %v1057_v60 = vpop.f32.mrb[2].mxu1 }
 0x158   :  { %v1728_v61 = vadd.f32 %v951_v59, %v163_v47  ;;  %v1736_v62 = vadd.f32 %v1057_v60, %v171_v48  ;;  %v953_v63 = vpop.f32.mrb[3].mxu0  ;;  %v1059_v0 = vpop.f32.mrb[3].mxu1  ;;  %v1072_v3 = vmax.f32 %v1726_v53, 0.0  ;;  %v1074_v4 = vmax.f32 %v1734_v54, 0.0 }
 0x159   :  { %v1729_v1 = vadd.f32 %v953_v63, %v167_v49  ;;  %v1737_v2 = vadd.f32 %v1059_v0, %v175_v50  ;;  %v1073_v7 = vmax.f32 %v1727_v57, 0.0  ;;  %v1075_v8 = vmax.f32 %v1735_v58, 0.0 }
 0x15a   :  { %v1076_v5 = vmax.f32 %v1728_v61, 0.0  ;;  %v1078_v6 = vmax.f32 %v1736_v62, 0.0 }
 0x15b   :  { %v1077_v9 = vmax.f32 %v1729_v1, 0.0  ;;  %v1079_v10 = vmax.f32 %v1737_v2, 0.0 }
 0x15c   :  { %v1088_v11 = vpack.c.bf16 %v1076_v5, %v1072_v3  ;;  %v1090_v12 = vpack.c.bf16 %v1078_v6, %v1074_v4 }
 0x15d   :  { %v1089_v13 = vpack.c.bf16 %v1077_v9, %v1073_v7  ;;  %v1091_v14 = vpack.c.bf16 %v1079_v10, %v1075_v8  ;;  %v957_v15 = vpop.f32.mrb[4].mxu0  ;;  %v1063_v16 = vpop.f32.mrb[4].mxu1 }
 0x15e   :  { %v1730_v17 = vadd.f32 %v957_v15, %v163_v47  ;;  %v1738_v18 = vadd.f32 %v1063_v16, %v171_v48  ;;  %v959_v19 = vpop.f32.mrb[5].mxu0  ;;  %v1065_v20 = vpop.f32.mrb[5].mxu1 }
 0x15f   :  { %v1731_v21 = vadd.f32 %v959_v19, %v167_v49  ;;  %v1739_v22 = vadd.f32 %v1065_v20, %v175_v50  ;;  %v961_v23 = vpop.f32.mrb[6].mxu0  ;;  %v1067_v24 = vpop.f32.mrb[6].mxu1  ;;  %1391 = vmatprep.mubr.bf16.mxu0 %v1089_v13  ;;  %1440 = vmatprep.mubr.bf16.mxu1 %v1091_v14 }
 0x160   :  { %v1732_v25 = vadd.f32 %v961_v23, %v163_v47  ;;  %v1740_v26 = vadd.f32 %v1067_v24, %v171_v48  ;;  %v963_v27 = vpop.f32.mrb[7].mxu0  ;;  %v1069_v28 = vpop.f32.mrb[7].mxu1  ;;  %1392 = vmatmul.mubr.bf16.vlgmr.msra.gmra.mrb[8].mxu0 %v1088_v11  ;;  %1441 = vmatmul.mubr.bf16.vlgmr.msra.gmra.mrb[8].mxu1 %v1090_v12  ;;  %v1080_v31 = vmax.f32 %v1730_v17, 0.0  ;;  %v1082_v32 = vmax.f32 %v1738_v18, 0.0 }
 0x161   :  { %v1733_v29 = vadd.f32 %v963_v27, %v167_v49  ;;  %v1741_v30 = vadd.f32 %v1069_v28, %v175_v50  ;;  %v1081_v35 = vmax.f32 %v1731_v21, 0.0  ;;  %v1083_v36 = vmax.f32 %v1739_v22, 0.0 }
 0x162   :  { %v1084_v33 = vmax.f32 %v1732_v25, 0.0  ;;  %v1086_v34 = vmax.f32 %v1740_v26, 0.0 }
 0x163   :  { %v1085_v37 = vmax.f32 %v1733_v29, 0.0  ;;  %v1087_v38 = vmax.f32 %v1741_v30, 0.0 }
 0x164   :  { %v1092_v39 = vpack.c.bf16 %v1084_v33, %v1080_v31  ;;  %v1094_v40 = vpack.c.bf16 %v1086_v34, %v1082_v32 }
 0x165   :  { %v1093_v41 = vpack.c.bf16 %v1085_v37, %v1081_v35  ;;  %v1095_v42 = vpack.c.bf16 %v1087_v38, %v1083_v36 }
 0x167   :  { %1399 = vmatprep.mubr.bf16.mxu0 %v1093_v41  ;;  %1448 = vmatprep.mubr.bf16.mxu1 %v1095_v42 }
 0x168   :  { %1400 = vmatmul.mubr.bf16.gmra.mrb[12].mxu0 %v1092_v39  ;;  %1449 = vmatmul.mubr.bf16.gmra.mrb[12].mxu1 %v1094_v40 }
 0x233   :  { %v1686_v43 = vpop.f32.mrb[8].mxu0  ;;  %v1714_v44 = vpop.f32.mrb[8].mxu1 }
 0x234   :  { %v1687_v46 = vpop.f32.mrb[9].mxu0  ;;  %v1715_v47 = vpop.f32.mrb[9].mxu1 }
 0x235   :  { %v1688_v48 = vadd.f32 %v1687_v46, %v1686_v43  ;;  %v1716_v49 = vadd.f32 %v1715_v47, %v1714_v44  ;;  %v1689_v50 = vpop.f32.mrb[10].mxu0  ;;  %v1717_v51 = vpop.f32.mrb[10].mxu1 }
 0x236   :  { %v1690_v52 = vpop.f32.mrb[11].mxu0  ;;  %v1718_v53 = vpop.f32.mrb[11].mxu1 }
 0x237   :  { %v1394_v54 = vadd.f32 %v1688_v48, %v1637_v45  ;;  %v1691_v55 = vadd.f32 %v1690_v52, %v1689_v50  ;;  %v1719_v56 = vadd.f32 %v1718_v53, %v1717_v51 }
 0x239   :  { %v1397_v57 = vadd.f32 %v1691_v55, %v1637_v45  ;;  %v1443_v58 = vadd.f32 %v1716_v49, %v1394_v54 }
 0x23b   :  { %v1446_v59 = vadd.f32 %v1719_v56, %v1397_v57  ;;  %v1692_v60 = vpop.f32.mrb[12].mxu0  ;;  %v1720_v61 = vpop.f32.mrb[12].mxu1  ;;  %v1457_v62 = vmul.f32 %v1443_v58, %v1443_v58 }
 0x23c   :  { %v1693_v63 = vpop.f32.mrb[13].mxu0  ;;  %v1721_v0 = vpop.f32.mrb[13].mxu1 }
 0x23d   :  { %v1694_v1 = vadd.f32 %v1693_v63, %v1692_v60  ;;  %v1722_v2 = vadd.f32 %v1721_v0, %v1720_v61  ;;  %v1695_v3 = vpop.f32.mrb[14].mxu0  ;;  %v1723_v4 = vpop.f32.mrb[14].mxu1  ;;  %1461 = vadd.xlane.f32.xlu0 %v1457_v62  ;;  %v1458_v10 = vmul.f32 %v1446_v59, %v1446_v59 }
 0x23e   :  { %v1696_v5 = vpop.f32.mrb[15].mxu0  ;;  %v1724_v6 = vpop.f32.mrb[15].mxu1 }
 0x23f   :  { %v1402_v7 = vadd.f32 %v1694_v1, %v1637_v45  ;;  %v1697_v8 = vadd.f32 %v1696_v5, %v1695_v3  ;;  %v1725_v9 = vadd.f32 %v1724_v6, %v1723_v4 }
 0x241   :  { %v1405_v11 = vadd.f32 %v1697_v8, %v1637_v45  ;;  %1463 = vadd.xlane.f32.xlu0 %v1458_v10  ;;  %v1451_v12 = vadd.f32 %v1722_v2, %v1402_v7 }
 0x243   :  { %v1454_v13 = vadd.f32 %v1725_v9, %v1405_v11  ;;  %v1459_v14 = vmul.f32 %v1451_v12, %v1451_v12 }
 0x245   :  { %1465 = vadd.xlane.f32.xlu1 %v1459_v14  ;;  %v1460_v15 = vmul.f32 %v1454_v13, %v1454_v13 }
 0x249   :  { %1467 = vadd.xlane.f32.xlu1 %v1460_v15 }
 0x2ca   :  { %v1462_v16 = vpop.xlane.xlu0 %1461 }
 0x2cb   :  { %v1469_v17 = vmax.f32 %v1462_v16, 1e-24 }
 0x2cd   :  { %1997 = vrsqrt.f32 %v1469_v17 }
 0x2ce   :  { %v1464_v18 = vpop.xlane.xlu0 %1463 }
 0x2cf   :  { %v1470_v19 = vmax.f32 %v1464_v18, 1e-24 }
 0x2d1   :  { %1999 = vrsqrt.f32 %v1470_v19 }
 0x2d2   :  { %v1466_v20 = vpop.xlane.xlu1 %1465 }
 0x2d3   :  { %v1471_v21 = vmax.f32 %v1466_v20, 1e-24 }
 0x2d5   :  { %2001 = vrsqrt.f32 %v1471_v21 }
 0x2d6   :  { %v1468_v22 = vpop.xlane.xlu1 %1467 }
 0x2d7   :  { %v1998_v23 = vpop.eup %1997  ;;  %v1472_v24 = vmax.f32 %v1468_v22, 1e-24 }
 0x2d8   :  { %v1477_v25 = vmul.f32 %v1998_v23, %v1443_v58 }
 0x2d9   :  { %2003 = vrsqrt.f32 %v1472_v24 }
 0x2da   :  { %1481 = vst [vmem:[#allocation2] sm:$0xff] %v1477_v25 }
 0x2db   :  { %v2000_v26 = vpop.eup %1999 }
 0x2dc   :  { %v1478_v27 = vmul.f32 %v2000_v26, %v1446_v59 }
 0x2de   :  { %1482 = vst [vmem:[#allocation2 + $0x8] sm:$0xff] %v1478_v27 }
 0x2df   :  { %v2002_v28 = vpop.eup %2001 }
 0x2e0   :  { %v1479_v29 = vmul.f32 %v2002_v28, %v1451_v12 }
 0x2e2   :  { %1483 = vst [vmem:[#allocation2 + $0x10] sm:$0xff] %v1479_v29 }
 0x2e3   :  { %v2004_v30 = vpop.eup %2003 }
 0x2e4   :  { %v1480_v31 = vmul.f32 %v2004_v30, %v1454_v13 }
 0x2e6   :  { %1484 = vst [vmem:[#allocation2 + $0x18] sm:$0xff] %v1480_v31 }
 0x2e7   :  { %2016 = shalt.err (!%p2013_p4)
}
 0x2e8   :  { %s2017_s30 = scalar_lea.hbm %s2589_s5, 512 }
 0x2e9   :  { %p2018_p5 = scmp.ne.s32.totalorder %s2589_s5, %s2017_s30  ;;  %p2021_p6 = scmp.lt.u32.totalorder %s2017_s30, %s2589_s5 }
 0x2eb   :  { %p2023_p7 = pnand %p2021_p6, %p2018_p5 }
 0x2ed   :  { %2026 = shalt.err (!%p2023_p7)
}
 0x2ee   :  { %s2030_s10 = smov 128   ;;  %s2031_s11 = smov 8  }
 0x2ef   :  { %1496 = dma.vmem_to_hbm [thread:$0]  %s1491_s26, 512, %s2589_s5, [#allocation3], %s2030_s10, %s2030_s10, %s2031_s11  }
 0x2f0   :  { %2027 = dma.done.wait [#allocation3], 512  }
 0x2f1   :  { %2028 = vsyncadd [#allocation3], 4294966784 }
 0x2f2   :  { %1500 = vsyncpa [#allocation3], 1 }

</bundles_post_ra>
